<compile_context>
chip_gen: v5e
topology: v5e:2x2
jax: 0.10.0
libtpu: 0.0.40
codegen_flags: <defaults>
</compile_context>

<pallas_src>
import jax
import jax.numpy as jnp
from jax.experimental import pallas as pl
from jax.experimental.pallas import tpu as pltpu

NEG_SLOPE = 0.01   # nn.LeakyReLU default negative_slope
MAX_TM = 1024      # batch-tile rows; kernel is HBM/overhead-bound, big tiles win


def _leaky_relu(x):
    return jnp.where(x >= 0, x, NEG_SLOPE * x)


def _decoder_kernel(z_ref, w1_ref, b1_ref, w2_ref, b2_ref, w3_ref, b3_ref, x_ref):
    # Layer 1: Linear(hidden -> 2*hidden) + LeakyReLU (+ Dropout: identity in eval)
    z = z_ref[...].astype(jnp.bfloat16)   # in-kernel cast: read f32 once, feed MXU bf16
    h1 = jnp.dot(z, w1_ref[...], preferred_element_type=jnp.float32) + b1_ref[...]
    h1 = _leaky_relu(h1)                  # f32 elementwise on the VPU

    # Layer 2: Linear(2*hidden -> 4*hidden) + LeakyReLU (+ Dropout: identity in eval)
    h2 = jnp.dot(h1.astype(jnp.bfloat16), w2_ref[...],
                 preferred_element_type=jnp.float32) + b2_ref[...]
    h2 = _leaky_relu(h2)

    # Layer 3: Linear(4*hidden -> output_size)  (unpadded: full last dim in the block)
    x = jnp.dot(h2.astype(jnp.bfloat16), w3_ref[...],
                preferred_element_type=jnp.float32) + b3_ref[...]
    x_ref[...] = x.astype(x_ref.dtype)


def _pick_tile(batch):
    """Largest useful batch tile, but aim for >= 2 grid steps when the batch
    allows it so the 'parallel' axis can use both TensorCores on v7x."""
    if batch <= 8:
        return batch                       # full-array block (legal: equals array dim)
    half = pl.cdiv(batch, 2)
    return min(MAX_TM, pl.cdiv(half, 8) * 8)


def base_decoder_forward(z, params, output_size, out_dtype=jnp.float32):
    """z: [B, hidden_size] f32 (or bf16). params: dict of w1,b1,w2,b2,w3,b3
    (weights bf16 stored [in, out]; biases f32). Returns [B, output_size]."""
    w1, b1 = params["w1"], params["b1"]
    w2, b2 = params["w2"], params["b2"]
    w3, b3 = params["w3"], params["b3"]
    B, H = z.shape
    assert w3.shape[1] == output_size

    tm = _pick_tile(B)
    grid = (pl.cdiv(B, tm),)               # partial last tile handled by Pallas

    # Weights/biases: full blocks with constant index_map -> VMEM-resident across grid.
    full = lambda a: pl.BlockSpec(a.shape, lambda i: (0,) * a.ndim)

    return pl.pallas_call(
        _decoder_kernel,
        out_shape=jax.ShapeDtypeStruct((B, output_size), out_dtype),
        grid=grid,
        in_specs=[pl.BlockSpec((tm, H), lambda i: (i, 0)),
                  full(w1), full(b1), full(w2), full(b2), full(w3), full(b3)],
        out_specs=pl.BlockSpec((tm, output_size), lambda i: (i, 0)),
        compiler_params=pltpu.CompilerParams(
            dimension_semantics=("parallel",)),  # shards batch across TCs on v7x
    )(z, w1, b1, w2, b2, w3, b3)


def init_params(key, hidden_size=32, output_size=16):
    """Deterministic init mimicking nn.Linear's uniform(-1/sqrt(fan_in), 1/sqrt(fan_in)).
    Weights stored [in, out] (transposed vs. PyTorch's [out, in]) in bf16; biases f32."""
    dims = [(hidden_size, 2 * hidden_size),
            (2 * hidden_size, 4 * hidden_size),
            (4 * hidden_size, output_size)]
    params = {}
    for i, (fan_in, fan_out) in enumerate(dims, start=1):
        key, kw, kb = jax.random.split(key, 3)
        bound = 1.0 / jnp.sqrt(fan_in)
        params[f"w{i}"] = jax.random.uniform(
            kw, (fan_in, fan_out), jnp.float32,
            minval=-bound, maxval=bound).astype(jnp.bfloat16)
        params[f"b{i}"] = jax.random.uniform(
            kb, (1, fan_out), jnp.float32, minval=-bound, maxval=bound)
    return params


def _reference_forward(z, params):
    """Pure-JAX reference mirroring the kernel numerics (bf16 MXU inputs, f32 accum)."""
    h = jnp.dot(z.astype(jnp.bfloat16), params["w1"],
                preferred_element_type=jnp.float32) + params["b1"]
    h = jnp.where(h >= 0, h, NEG_SLOPE * h)
    h = jnp.dot(h.astype(jnp.bfloat16), params["w2"],
                preferred_element_type=jnp.float32) + params["b2"]
    h = jnp.where(h >= 0, h, NEG_SLOPE * h)
    return jnp.dot(h.astype(jnp.bfloat16), params["w3"],
                   preferred_element_type=jnp.float32) + params["b3"]


if __name__ == "__main__":
    key = jax.random.PRNGKey(0)
    key, kz1, kz2 = jax.random.split(key, 3)

    hidden_size, output_size = 32, 16
    params = init_params(key, hidden_size=hidden_size, output_size=output_size)

    # Case 1: small batch, single grid step.
    z1 = jax.random.normal(kz1, (8, hidden_size), jnp.float32)
    x1 = base_decoder_forward(z1, params, output_size)
    jax.block_until_ready(x1)
    assert x1.shape == (8, output_size)
    assert jnp.allclose(x1, _reference_forward(z1, params), atol=2e-3, rtol=2e-3), \
        "mismatch vs JAX reference (case 1)"

    # Case 2: batch not a multiple of the tile -> exercises the partial last tile
    # and the >=2-grid-step path.
    z2 = jax.random.normal(kz2, (20, hidden_size), jnp.float32)
    x2 = base_decoder_forward(z2, params, output_size)
    jax.block_until_ready(x2)
    assert x2.shape == (20, output_size)
    assert jnp.allclose(x2, _reference_forward(z2, params), atol=2e-3, rtol=2e-3), \
        "mismatch vs JAX reference (case 2)"

    print("KERNEL_OK")
</pallas_src>

<mosaic_0001>
module attributes {stable_mosaic.version = 11 : i64} {
  func.func @_decoder_kernel(%arg0: i32, %arg1: memref<8x32xf32, #tpu.memory_space<vmem>>, %arg2: memref<32x64xbf16, #tpu.memory_space<vmem>>, %arg3: memref<1x64xf32, #tpu.memory_space<vmem>>, %arg4: memref<64x128xbf16, #tpu.memory_space<vmem>>, %arg5: memref<1x128xf32, #tpu.memory_space<vmem>>, %arg6: memref<128x16xbf16, #tpu.memory_space<vmem>>, %arg7: memref<1x16xf32, #tpu.memory_space<vmem>>, %arg8: memref<8x16xf32, #tpu.memory_space<vmem>>) attributes {dimension_semantics = [#tpu.dimension_semantics<parallel>], iteration_bounds = array<i64: 1>, scalar_prefetch = 0 : i64, scratch_operands = 0 : i64, tpu.core_type = #tpu.core_type<tc>, window_params = [{transform_indices = @transform_0, window_bounds = array<i64: 8, 32>}, {pipeline_mode = #tpu.pipeline_mode<synchronous>, transform_indices = @transform_1, window_bounds = array<i64: 32, 64>}, {pipeline_mode = #tpu.pipeline_mode<synchronous>, transform_indices = @transform_2, window_bounds = array<i64: 1, 64>}, {pipeline_mode = #tpu.pipeline_mode<synchronous>, transform_indices = @transform_3, window_bounds = array<i64: 64, 128>}, {pipeline_mode = #tpu.pipeline_mode<synchronous>, transform_indices = @transform_4, window_bounds = array<i64: 1, 128>}, {pipeline_mode = #tpu.pipeline_mode<synchronous>, transform_indices = @transform_5, window_bounds = array<i64: 128, 16>}, {pipeline_mode = #tpu.pipeline_mode<synchronous>, transform_indices = @transform_6, window_bounds = array<i64: 1, 16>}, {transform_indices = @transform_7, window_bounds = array<i64: 8, 16>}]} {
    %c0 = arith.constant 0 : index
    %c0_0 = arith.constant 0 : index
    %0 = vector.load %arg1[%c0, %c0_0] : memref<8x32xf32, #tpu.memory_space<vmem>>, vector<8x32xf32>
    %1 = arith.truncf %0 : vector<8x32xf32> to vector<8x32xbf16>
    %c0_1 = arith.constant 0 : index
    %c0_2 = arith.constant 0 : index
    %2 = vector.load %arg2[%c0_1, %c0_2] : memref<32x64xbf16, #tpu.memory_space<vmem>>, vector<32x64xbf16>
    %cst = arith.constant dense<0.000000e+00> : vector<8x64xf32>
    %3 = tpu.matmul %1, %2, %cst {dimension_numbers = #tpu.dot_dimension_numbers<[1], [0], [0], [1], [0, 0, 1, 1], [], []>} : vector<8x32xbf16>, vector<32x64xbf16>, vector<8x64xf32> -> vector<8x64xf32>
    %c0_3 = arith.constant 0 : index
    %c0_4 = arith.constant 0 : index
    %4 = vector.load %arg3[%c0_3, %c0_4] : memref<1x64xf32, #tpu.memory_space<vmem>>, vector<1x64xf32>
    %5 = vector.broadcast %4 : vector<1x64xf32> to vector<8x64xf32>
    %6 = arith.addf %3, %5 : vector<8x64xf32>
    %cst_5 = arith.constant 0.000000e+00 : f32
    %7 = vector.broadcast %cst_5 : f32 to vector<8x64xf32>
    %8 = arith.cmpf oge, %6, %7 : vector<8x64xf32>
    %cst_6 = arith.constant 0.00999999977 : f32
    %9 = vector.broadcast %cst_6 : f32 to vector<8x64xf32>
    %10 = arith.mulf %9, %6 : vector<8x64xf32>
    %11 = arith.select %8, %6, %10 : vector<8x64xi1>, vector<8x64xf32>
    %12 = arith.truncf %11 : vector<8x64xf32> to vector<8x64xbf16>
    %c0_7 = arith.constant 0 : index
    %c0_8 = arith.constant 0 : index
    %13 = vector.load %arg4[%c0_7, %c0_8] : memref<64x128xbf16, #tpu.memory_space<vmem>>, vector<64x128xbf16>
    %cst_9 = arith.constant dense<0.000000e+00> : vector<8x128xf32>
    %14 = tpu.matmul %12, %13, %cst_9 {dimension_numbers = #tpu.dot_dimension_numbers<[1], [0], [0], [1], [0, 0, 1, 1], [], []>} : vector<8x64xbf16>, vector<64x128xbf16>, vector<8x128xf32> -> vector<8x128xf32>
    %c0_10 = arith.constant 0 : index
    %c0_11 = arith.constant 0 : index
    %15 = vector.load %arg5[%c0_10, %c0_11] : memref<1x128xf32, #tpu.memory_space<vmem>>, vector<1x128xf32>
    %16 = vector.broadcast %15 : vector<1x128xf32> to vector<8x128xf32>
    %17 = arith.addf %14, %16 : vector<8x128xf32>
    %cst_12 = arith.constant 0.000000e+00 : f32
    %18 = vector.broadcast %cst_12 : f32 to vector<8x128xf32>
    %19 = arith.cmpf oge, %17, %18 : vector<8x128xf32>
    %cst_13 = arith.constant 0.00999999977 : f32
    %20 = vector.broadcast %cst_13 : f32 to vector<8x128xf32>
    %21 = arith.mulf %20, %17 : vector<8x128xf32>
    %22 = arith.select %19, %17, %21 : vector<8x128xi1>, vector<8x128xf32>
    %23 = arith.truncf %22 : vector<8x128xf32> to vector<8x128xbf16>
    %c0_14 = arith.constant 0 : index
    %c0_15 = arith.constant 0 : index
    %24 = vector.load %arg6[%c0_14, %c0_15] : memref<128x16xbf16, #tpu.memory_space<vmem>>, vector<128x16xbf16>
    %cst_16 = arith.constant dense<0.000000e+00> : vector<8x16xf32>
    %25 = tpu.matmul %23, %24, %cst_16 {dimension_numbers = #tpu.dot_dimension_numbers<[1], [0], [0], [1], [0, 0, 1, 1], [], []>} : vector<8x128xbf16>, vector<128x16xbf16>, vector<8x16xf32> -> vector<8x16xf32>
    %c0_17 = arith.constant 0 : index
    %c0_18 = arith.constant 0 : index
    %26 = vector.load %arg7[%c0_17, %c0_18] : memref<1x16xf32, #tpu.memory_space<vmem>>, vector<1x16xf32>
    %27 = vector.broadcast %26 : vector<1x16xf32> to vector<8x16xf32>
    %28 = arith.addf %25, %27 : vector<8x16xf32>
    %c0_19 = arith.constant 0 : index
    %c0_20 = arith.constant 0 : index
    %29 = vector.load %arg8[%c0_19, %c0_20] : memref<8x16xf32, #tpu.memory_space<vmem>>, vector<8x16xf32>
    tpu.vector_store %arg8[%c0_19, %c0_20], %28 {strides = array<i32>} : memref<8x16xf32, #tpu.memory_space<vmem>>, vector<8x16xf32>,
    return
  }
  func.func @transform_0(%arg0: i32) -> (i32, i32) {
    %c0_i32 = arith.constant 0 : i32
    %c0_i32_0 = arith.constant 0 : i32
    return %arg0, %c0_i32 : i32, i32
  }
  func.func @transform_1(%arg0: i32) -> (i32, i32) {
    %c0_i32 = arith.constant 0 : i32
    %c0_i32_0 = arith.constant 0 : i32
    %c0_i32_1 = arith.constant 0 : i32
    return %c0_i32, %c0_i32_0 : i32, i32
  }
  func.func @transform_2(%arg0: i32) -> (i32, i32) {
    %c0_i32 = arith.constant 0 : i32
    %c0_i32_0 = arith.constant 0 : i32
    %c0_i32_1 = arith.constant 0 : i32
    return %c0_i32, %c0_i32_0 : i32, i32
  }
  func.func @transform_3(%arg0: i32) -> (i32, i32) {
    %c0_i32 = arith.constant 0 : i32
    %c0_i32_0 = arith.constant 0 : i32
    %c0_i32_1 = arith.constant 0 : i32
    return %c0_i32, %c0_i32_0 : i32, i32
  }
  func.func @transform_4(%arg0: i32) -> (i32, i32) {
    %c0_i32 = arith.constant 0 : i32
    %c0_i32_0 = arith.constant 0 : i32
    %c0_i32_1 = arith.constant 0 : i32
    return %c0_i32, %c0_i32_0 : i32, i32
  }
  func.func @transform_5(%arg0: i32) -> (i32, i32) {
    %c0_i32 = arith.constant 0 : i32
    %c0_i32_0 = arith.constant 0 : i32
    %c0_i32_1 = arith.constant 0 : i32
    return %c0_i32, %c0_i32_0 : i32, i32
  }
  func.func @transform_6(%arg0: i32) -> (i32, i32) {
    %c0_i32 = arith.constant 0 : i32
    %c0_i32_0 = arith.constant 0 : i32
    %c0_i32_1 = arith.constant 0 : i32
    return %c0_i32, %c0_i32_0 : i32, i32
  }
  func.func @transform_7(%arg0: i32) -> (i32, i32) {
    %c0_i32 = arith.constant 0 : i32
    %c0_i32_0 = arith.constant 0 : i32
    return %arg0, %c0_i32 : i32, i32
  }
}

</mosaic_0001>

<bundles_post_ra>
// kernel: tpu_custom_call.1
= control target key start
LH: loop header
LB: loop body
LE: loop exit
PB: predicated region body
PF: predicated region fallthrough
CT: control target
= control target key end

     0   :  { %s427_s0 = inlined_call_operand.vmem [shape: f32[8,32], index: 0, kind: input, shape index: {}]   ;;  %s428_s1 = inlined_call_operand.vmem [shape: bf16[32,64], index: 1, kind: input, shape index: {}]   ;;  %s429_s2 = inlined_call_operand.vmem [shape: f32[1,64], index: 2, kind: input, shape index: {}]   ;;  %s430_s3 = inlined_call_operand.vmem [shape: bf16[64,128], index: 3, kind: input, shape index: {}]   ;;  %s431_s4 = inlined_call_operand.vmem [shape: f32[1,128], index: 4, kind: input, shape index: {}]   ;;  %s432_s5 = inlined_call_operand.vmem [shape: bf16[128,16], index: 5, kind: input, shape index: {}]   ;;  %s433_s6 = inlined_call_operand.vmem [shape: f32[1,16], index: 6, kind: input, shape index: {}]   ;;  %s434_s7 = inlined_call_operand.hbm [shape: f32[8,16], index: 7, kind: output, shape index: {}]  }
   0x1   :  { %v286_v0 = vld [vmem:[%s428_s1 + $0x8] sm:$0xff]  ;;  %v285_v1 = vld [vmem:[%s428_s1] sm:$0xff]  ;;  %v290_v2 = vld [vmem:[%s430_s3 + $0x18] sm:$0xff] }
   0x2   :  { %60 = vmatpush.bf16.msra.mxu0 %v286_v0  ;;  %v28_v3 = vld [vmem:[%s427_s0] sm:$0xff]  ;;  %115 = vmatpush.bf16.msra.mxu1 %v290_v2  ;;  %v289_v4 = vld [vmem:[%s430_s3 + $0x10] sm:$0xff] }
   0x3   :  { %12 = vsyncpa [#allocation3], 0  ;;  %v29_v5 = vpack.c.bf16 %v28_v3, %v28_v3  ;;  %vm50_vm0 = vcmask 261120   ;;  %v288_v6 = vld [vmem:[%s430_s3 + $0x8] sm:$0xff]  ;;  %v287_v7 = vld [vmem:[%s430_s3] sm:$0xff]  ;;  %vm107_vm2 = vcmask 523264  }
   0x4   :  { %v298_v8 = vld [vmem:[%s432_s5 + $0x38] sm:$0xff]  ;;  %v297_v9 = vld [vmem:[%s432_s5 + $0x30] sm:$0xff]  ;;  %v296_v10 = vld [vmem:[%s432_s5 + $0x28] sm:$0xff]  ;;  %s329_s10 = smov [#allocation2]   ;;  %s218_s12 = sshll.u32 %s434_s7, 4  ;;  %vm209_vm4 = vcmask 130048   ;;  %s219_s12 = int_to_ptr.hbm [resolvable:$true] %s218_s12 }
   0x5   :  { %196 = vmatpush.bf16.msra.mxu2 %v298_v8  ;;  %v295_v11 = vld [vmem:[%s432_s5 + $0x20] sm:$0xff]  ;;  %v294_v12 = vld [vmem:[%s432_s5 + $0x18] sm:$0xff]  ;;  %v293_v13 = vld [vmem:[%s432_s5 + $0x10] sm:$0xff]  ;;  %s216_s1 = sshll.u32 %s329_s10, 4  ;;  %s217_s1 = int_to_ptr.vmem [resolvable:$true] %s216_s1 }
   0x6   :  { %61 = vmatpush.bf16.msra.mxu0 %v285_v1  ;;  %116 = vmatpush.bf16.msra.mxu1 %v289_v4  ;;  %v300_v14 = vld [vmem:[%s429_s2] ss:$0 sm:$0xff]  ;;  %v292_v21 = vld [vmem:[%s432_s5 + $0x8] sm:$0xff] }
   0x7   :  { %v291_v22 = vld [vmem:[%s432_s5] sm:$0xff] }
   0x8   :  { %v301_v23 = vld [vmem:[%s431_s4] ss:$0 sm:$0xff] }
   0x9   :  { %235 = vmatmul.msk.bf16.vlgmr.msra.gmra.mxu0 %vm50_vm0, %v29_v5  ;;  %197 = vmatpush.bf16.msra.mxu2 %v297_v9  ;;  %v302_v30 = vld [vmem:[%s433_s6] ss:$0 sm:$0xff] }
   0xa   :  { %117 = vmatpush.bf16.msra.mxu1 %v288_v6 }
   0xd   :  { %198 = vmatpush.bf16.msra.mxu2 %v296_v10 }
   0xe   :  { %118 = vmatpush.bf16.msra.mxu1 %v287_v7 }
  0x11   :  { %199 = vmatpush.bf16.msra.mxu2 %v295_v11 }
  0x15   :  { %200 = vmatpush.bf16.msra.mxu2 %v294_v12 }
  0x19   :  { %201 = vmatpush.bf16.msra.mxu2 %v293_v13 }
  0x1d   :  { %202 = vmatpush.bf16.msra.mxu2 %v292_v21 }
  0x21   :  { %203 = vmatpush.bf16.msra.mxu2 %v291_v22 }
  0x86   :  { %v63_v15 = vpop.f32.mrf.mxu0 }
  0x87   :  { %v64_v16 = vadd.f32 %v300_v14, %v63_v15 }
  0x89   :  { %vm67_vm1 = vcmp.ge.f32.partialorder %v64_v16, 0.0  ;;  %v68_v17 = vmul.f32 0.01, %v64_v16 }
  0x8b   :  { %v69_v18 = vsel %vm67_vm1, %v64_v16, %v68_v17 }
  0x8c   :  { %v70_v19 = vpack.c.bf16 %v69_v18, %v69_v18 }
  0x8e   :  { %v65_v20 = vpop.f32.mrf.mxu0  ;;  %252 = vmatmul.msk.bf16.vlgmr.msra.gmra.mxu1 %vm107_vm2, %v70_v19 }
 0x10b   :  { %v120_v24 = vpop.f32.mrf.mxu1 }
 0x10c   :  { %v121_v25 = vadd.f32 %v301_v23, %v120_v24 }
 0x10e   :  { %v125_v26 = vmul.f32 0.01, %v121_v25  ;;  %vm124_vm3 = vcmp.ge.f32.partialorder %v121_v25, 0.0 }
 0x110   :  { %v126_v27 = vsel %vm124_vm3, %v121_v25, %v125_v26 }
 0x111   :  { %v127_v28 = vpack.c.bf16 %v126_v27, %v126_v27 }
 0x113   :  { %v122_v29 = vpop.f32.mrf.mxu1  ;;  %204 = vmatmul.bf16.vlgmr.msra.gmra.mxu2 %v127_v28 }
 0x196   :  { %v205_v31 = vpop.f32.mrf.mxu2 }
 0x197   :  { %v206_v32 = vadd.f32 %v302_v30, %v205_v31 }
 0x199   :  { %210 = vst.msk [vmem:[#allocation2] sm:$0xff] %vm209_vm4, %v206_v32 }
 0x19a   :  { %221 = dma.vmem_to_hbm [thread:$0]  %s217_s1, 128, %s219_s12, [#allocation3]  }
 0x19e   :  { %v207_v33 = vpop.f32.mrf.mxu2 }
 0x19f   :  { %327 = dma.done.wait [#allocation3], 128  }
 0x1a0   :  { %328 = vsyncadd [#allocation3], 4294967168 }
 0x1a1   :  { %226 = vsyncpa [#allocation3], 1 }

</bundles_post_ra>
